<compile_context>
chip_gen: v5e
topology: v5e:2x2
jax: 0.10.0
libtpu: 0.0.40
codegen_flags: <defaults>
</compile_context>

<pallas_src>
import functools

import numpy as np
import jax
import jax.numpy as jnp
from jax.experimental import pallas as pl
from jax.experimental.pallas import tpu as pltpu


def _round_up(x: int, m: int) -> int:
    return ((x + m - 1) // m) * m


# ---------------------------------------------------------------------------
# Glue: deterministic interpolation weight matrix (matches F.interpolate,
# align_corners=False, for 'nearest' (legacy nearest, NOT 'nearest-exact'),
# 'linear', and 'cubic-*' -> bicubic degenerate to 1-D cubic).  Cached so the
# numpy build + device upload happen once per (K, F, mode).
# ---------------------------------------------------------------------------
@functools.lru_cache(maxsize=None)
def _interpolation_matrix(n_knots: int, forecast_size: int, mode: str) -> np.ndarray:
    K, F_ = n_knots, forecast_size
    scale = K / F_
    j = np.arange(F_)
    W = np.zeros((K, F_), dtype=np.float64)

    if mode == "nearest":
        # Matches PyTorch's legacy 'nearest' (floor(j*scale)), not 'nearest-exact'.
        idx = np.minimum(np.floor(j * scale).astype(np.int64), K - 1)
        W[idx, j] = 1.0
    elif mode == "linear":
        src = (j + 0.5) * scale - 0.5
        src = np.maximum(src, 0.0)
        i0 = np.minimum(np.floor(src).astype(np.int64), K - 1)
        i1 = np.minimum(i0 + 1, K - 1)
        lam = src - i0
        np.add.at(W, (i0, j), 1.0 - lam)
        np.add.at(W, (i1, j), lam)
    elif "cubic" in mode:
        # bicubic on a (1, K) image degenerates to 1-D cubic along the knot axis
        a = -0.75  # PyTorch's cubic coefficient
        src = (j + 0.5) * scale - 0.5
        i_fl = np.floor(src)
        t_ = src - i_fl

        def cubic_w(x):
            ax = np.abs(x)
            return np.where(
                ax <= 1.0,
                (a + 2.0) * ax**3 - (a + 3.0) * ax**2 + 1.0,
                np.where(ax < 2.0, a * ax**3 - 5.0 * a * ax**2 + 8.0 * a * ax - 4.0 * a, 0.0),
            )

        for off in range(-1, 3):
            w = cubic_w(t_ - off)
            idx = np.clip(i_fl.astype(np.int64) + off, 0, K - 1)
            np.add.at(W, (idx, j), w)
    else:
        raise ValueError(f"unsupported interpolation mode: {mode}")
    return W


@functools.lru_cache(maxsize=None)
def _padded_interp_weight(n_knots: int, forecast_size: int, mode: str):
    """f32 device constant [K, F_pad] with F_pad = round_up(F, 128) (lane-dense)."""
    w = _interpolation_matrix(n_knots, forecast_size, mode)
    f_pad = _round_up(forecast_size, 128)
    w_pad = np.zeros((n_knots, f_pad), dtype=np.float32)
    w_pad[:, :forecast_size] = w
    return jnp.asarray(w_pad)


# ---------------------------------------------------------------------------
# Pallas kernel: lane-dense forecast tile = knots_tile @ W  (f32 accumulation).
# ---------------------------------------------------------------------------
def _forecast_kernel(knots_ref, w_ref, forecast_ref):
    # Memory-bound: K (the contraction dim) is tiny compared to the MXU systolic
    # dimension, so the matmul itself is essentially free; the point of the kernel
    # is lane-aligned input DMA and lane-dense output stores.  (For K < 8 a VPU
    # broadcast-multiply-accumulate would also do; jnp.dot is fine here.)
    knots = knots_ref[...].astype(jnp.float32)                   # [TB, K]
    out = jnp.dot(knots, w_ref[...], preferred_element_type=jnp.float32)
    forecast_ref[...] = out.astype(forecast_ref.dtype)           # [TB, F_pad]


def _pick_batch_tile(batch, n_knots, f_pad, in_itemsize, out_itemsize, sublane,
                     budget_bytes=12 * 1024 * 1024):
    """Largest sublane-multiple batch tile whose double-buffered working set fits
    the budget (chosen so it also fits v7x's smaller 64 MiB VMEM with headroom)."""
    def working_set(tb):
        return (2 * tb * n_knots * in_itemsize      # double-buffered knots tile
                + 2 * tb * f_pad * out_itemsize     # double-buffered forecast tile
                + 2 * n_knots * f_pad * 4)          # resident W (conservatively x2)

    tb = _round_up(min(batch, 1024), sublane)
    while tb > sublane and working_set(tb) > budget_bytes:
        tb = max(sublane, _round_up(tb // 2, sublane))
    return tb


def identity_basis_forward(theta, insample_x_t, outsample_x_t, *,
                           backcast_size, forecast_size, interpolation_mode,
                           batch_tile=None):
    # insample_x_t / outsample_x_t are accepted but unused, matching the PyTorch
    # IdentityBasis forward signature used inside _NHITSBlock.
    del insample_x_t, outsample_x_t
    batch, total = theta.shape
    n_knots = total - backcast_size

    # Split OUTSIDE the kernel: backcast is a pure slice (zero kernel traffic),
    # knots is the only (lane-aligned) tensor the kernel reads.
    backcast = theta[:, :backcast_size]
    knots = theta[:, backcast_size:]

    w = _padded_interp_weight(n_knots, forecast_size, interpolation_mode)  # f32 [K, F_pad]
    f_pad = w.shape[1]

    in_itemsize = jnp.dtype(theta.dtype).itemsize
    out_itemsize = in_itemsize
    # Sub-32-bit dtypes pack along sublanes: (8,128) f32, (16,128) bf16, (32,128) int8.
    sublane = {4: 8, 2: 16, 1: 32}.get(in_itemsize, 8)

    if batch_tile is None:
        tb = _pick_batch_tile(batch, n_knots, f_pad, in_itemsize, out_itemsize, sublane)
    else:
        tb = _round_up(max(int(batch_tile), sublane), sublane)

    num_tiles = pl.cdiv(batch, tb)
    batch_pad = num_tiles * tb
    if batch_pad != batch:
        knots = jnp.pad(knots, ((0, batch_pad - batch), (0, 0)))

    working_set = (2 * tb * n_knots * in_itemsize
                   + 2 * tb * f_pad * out_itemsize
                   + 2 * n_knots * f_pad * 4)
    vmem_limit = int(min(max(4 * working_set, 16 * 1024 * 1024), 48 * 1024 * 1024))

    cost = pl.CostEstimate(
        flops=2 * batch_pad * n_knots * f_pad,
        transcendentals=0,
        bytes_accessed=(batch_pad * n_knots * in_itemsize      # knots in
                        + n_knots * f_pad * 4                  # W in (once)
                        + batch_pad * f_pad * out_itemsize),   # forecast out
    )

    forecast_padded = pl.pallas_call(
        _forecast_kernel,
        grid=(num_tiles,),
        in_specs=[
            pl.BlockSpec((tb, n_knots), lambda i: (i, 0)),      # knots: batch-tiled
            pl.BlockSpec((n_knots, f_pad), lambda i: (0, 0)),   # W: constant -> resident
        ],
        out_specs=pl.BlockSpec((tb, f_pad), lambda i: (i, 0)),  # lane-dense output tile
        out_shape=jax.ShapeDtypeStruct((batch_pad, f_pad), theta.dtype),
        compiler_params=pltpu.CompilerParams(
            dimension_semantics=("parallel",),   # shard batch tiles across TCs (v7x)
            vmem_limit_bytes=vmem_limit,
        ),
        cost_estimate=cost,
    )(knots, w)

    forecast = forecast_padded[:batch, :forecast_size]
    return backcast, forecast


# ---------------------------------------------------------------------------
# Self-test
# ---------------------------------------------------------------------------
def _reference(theta, backcast_size, forecast_size, mode):
    theta_np = np.asarray(theta, dtype=np.float64)
    n_knots = theta_np.shape[1] - backcast_size
    w = _interpolation_matrix(n_knots, forecast_size, mode)
    return theta_np[:, :backcast_size], theta_np[:, backcast_size:] @ w


if __name__ == "__main__":
    key = jax.random.PRNGKey(0)
    k1, k2, k3, k4 = jax.random.split(key, 4)

    # Case 1: small shapes, single batch tile, linear interpolation.
    batch, backcast_size, n_knots, forecast_size = 8, 16, 8, 24
    mode = "linear"
    theta = jax.random.normal(k1, (batch, backcast_size + n_knots), dtype=jnp.float32)
    insample_x_t = jax.random.normal(k2, (batch, backcast_size), dtype=jnp.float32)
    outsample_x_t = jax.random.normal(k3, (batch, forecast_size), dtype=jnp.float32)

    backcast, forecast = identity_basis_forward(
        theta, insample_x_t, outsample_x_t,
        backcast_size=backcast_size, forecast_size=forecast_size,
        interpolation_mode=mode)
    jax.block_until_ready((backcast, forecast))

    ref_bc, ref_fc = _reference(theta, backcast_size, forecast_size, mode)
    np.testing.assert_allclose(np.asarray(backcast), ref_bc, rtol=1e-6, atol=1e-6)
    np.testing.assert_allclose(np.asarray(forecast), ref_fc, rtol=1e-5, atol=1e-5)

    # Case 2: batch not divisible by the tile -> exercises multi-tile grid +
    # batch padding, and the cubic interpolation branch.
    batch2, forecast_size2, mode2 = 20, 12, "cubic"
    theta2 = jax.random.normal(k4, (batch2, backcast_size + n_knots), dtype=jnp.float32)
    backcast2, forecast2 = identity_basis_forward(
        theta2, None, None,
        backcast_size=backcast_size, forecast_size=forecast_size2,
        interpolation_mode=mode2, batch_tile=8)
    jax.block_until_ready((backcast2, forecast2))

    ref_bc2, ref_fc2 = _reference(theta2, backcast_size, forecast_size2, mode2)
    np.testing.assert_allclose(np.asarray(backcast2), ref_bc2, rtol=1e-6, atol=1e-6)
    np.testing.assert_allclose(np.asarray(forecast2), ref_fc2, rtol=1e-5, atol=1e-5)

    print("KERNEL_OK")
</pallas_src>

<mosaic_0001>
module attributes {stable_mosaic.version = 11 : i64} {
  func.func @_forecast_kernel(%arg0: i32, %arg1: memref<8x8xf32, #tpu.memory_space<vmem>>, %arg2: memref<8x128xf32, #tpu.memory_space<vmem>>, %arg3: memref<8x128xf32, #tpu.memory_space<vmem>>) attributes {dimension_semantics = [#tpu.dimension_semantics<parallel>], iteration_bounds = array<i64: 1>, scalar_prefetch = 0 : i64, scratch_operands = 0 : i64, tpu.core_type = #tpu.core_type<tc>, window_params = [{transform_indices = @transform_0, window_bounds = array<i64: 8, 8>}, {pipeline_mode = #tpu.pipeline_mode<synchronous>, transform_indices = @transform_1, window_bounds = array<i64: 8, 128>}, {transform_indices = @transform_2, window_bounds = array<i64: 8, 128>}]} {
    %c0 = arith.constant 0 : index
    %c0_0 = arith.constant 0 : index
    %0 = vector.load %arg1[%c0, %c0_0] : memref<8x8xf32, #tpu.memory_space<vmem>>, vector<8x8xf32>
    %c0_1 = arith.constant 0 : index
    %c0_2 = arith.constant 0 : index
    %1 = vector.load %arg2[%c0_1, %c0_2] : memref<8x128xf32, #tpu.memory_space<vmem>>, vector<8x128xf32>
    %cst = arith.constant dense<0.000000e+00> : vector<8x128xf32>
    %2 = tpu.matmul %0, %1, %cst {dimension_numbers = #tpu.dot_dimension_numbers<[1], [0], [0], [1], [0, 0, 1, 1], [], []>} : vector<8x8xf32>, vector<8x128xf32>, vector<8x128xf32> -> vector<8x128xf32>
    %c0_3 = arith.constant 0 : index
    %c0_4 = arith.constant 0 : index
    %3 = vector.load %arg3[%c0_3, %c0_4] : memref<8x128xf32, #tpu.memory_space<vmem>>, vector<8x128xf32>
    tpu.vector_store %arg3[%c0_3, %c0_4], %2 {strides = array<i32>} : memref<8x128xf32, #tpu.memory_space<vmem>>, vector<8x128xf32>,
    return
  }
  func.func @transform_0(%arg0: i32) -> (i32, i32) {
    %c0_i32 = arith.constant 0 : i32
    %c0_i32_0 = arith.constant 0 : i32
    return %arg0, %c0_i32 : i32, i32
  }
  func.func @transform_1(%arg0: i32) -> (i32, i32) {
    %c0_i32 = arith.constant 0 : i32
    %c0_i32_0 = arith.constant 0 : i32
    %c0_i32_1 = arith.constant 0 : i32
    return %c0_i32, %c0_i32_0 : i32, i32
  }
  func.func @transform_2(%arg0: i32) -> (i32, i32) {
    %c0_i32 = arith.constant 0 : i32
    %c0_i32_0 = arith.constant 0 : i32
    return %arg0, %c0_i32 : i32, i32
  }
}

</mosaic_0001>

<bundles_post_ra>
// kernel: tpu_custom_call.1
= control target key start
LH: loop header
LB: loop body
LE: loop exit
PB: predicated region body
PF: predicated region fallthrough
CT: control target
= control target key end

     0   :  { %7 = vsyncpa [#allocation3], 0  ;;  %s194_s0 = inlined_call_operand.hbm [shape: f32[8,8], index: 0, kind: input, shape index: {}]   ;;  %s195_s1 = inlined_call_operand.hbm [shape: f32[8,128], index: 1, kind: input, shape index: {}]   ;;  %s196_s2 = inlined_call_operand.hbm [shape: f32[8,128], index: 2, kind: output, shape index: {}]  }
   0x1   :  { %8 = vsyncpa [#allocation6], 0 }
   0x2   :  { %9 = vsyncpa [#allocation4], 0  ;;  %s15_s11 = sshll.u32 %s194_s0, 4  ;;  %s167_s12 = smov [#allocation2]   ;;  %s16_s11 = int_to_ptr.hbm [resolvable:$true] %s15_s11 }
   0x3   :  { %s17_s13 = sshll.u32 %s167_s12, 4  ;;  %s26_s16 = sshll.u32 %s195_s1, 4  ;;  %s18_s13 = int_to_ptr.vmem [resolvable:$true] %s17_s13  ;;  %s27_s16 = int_to_ptr.hbm [resolvable:$true] %s26_s16 }
   0x4   :  { %20 = dma.hbm_to_vmem [thread:$0]  %s16_s11, 128, %s18_s13, [#allocation3]  }
   0x5   :  { %s168_s17 = smov [#allocation5]  }
   0x6   :  { %s28_s18 = sshll.u32 %s168_s17, 4  ;;  %s29_s18 = int_to_ptr.vmem [resolvable:$true] %s28_s18 }
   0x7   :  { %31 = dma.hbm_to_vmem [thread:$0]  %s27_s16, 128, %s29_s18, [#allocation6]  }
   0x8   :  { %161 = dma.done.wait [#allocation3], 128  }
   0x9   :  { %162 = vsyncadd [#allocation3], 4294967168 }
   0xa   :  { %163 = dma.done.wait [#allocation6], 128  }
   0xb   :  { %164 = vsyncadd [#allocation6], 4294967168  ;;  %vm42_vm0 = vcmask 64512   ;;  %v41_v0 = vld [vmem:[#allocation5] sm:$0xff]  ;;  %v40_v1 = vld [vmem:[#allocation2] sm:$0xff]  ;;  %s169_s0 = smov [#allocation7]  }
   0xc   :  { %61 = vmatpush.msra.mxu0 %v41_v0  ;;  %s72_s19 = sshll.u32 %s169_s0, 4  ;;  %s74_s1 = sshll.u32 %s196_s2, 4  ;;  %s73_s19 = int_to_ptr.vmem [resolvable:$true] %s72_s19  ;;  %s75_s1 = int_to_ptr.hbm [resolvable:$true] %s74_s1 }
   0xd   :  { %85 = vmatmul.msk.f32.vlgmr.msra.gmra.mxu0 %vm42_vm0, %v40_v1 }
  0x8a   :  { %v63_v2 = vpop.f32.mrf.mxu0 }
  0x8b   :  { %66 = vst [vmem:[#allocation7] sm:$0xff] %v63_v2 }
  0x8c   :  { %77 = dma.vmem_to_hbm [thread:$0]  %s73_s19, 128, %s75_s1, [#allocation4]  }
  0x8d   :  { %165 = dma.done.wait [#allocation4], 128  }
  0x8e   :  { %166 = vsyncadd [#allocation4], 4294967168 }
  0x8f   :  { %82 = vsyncpa [#allocation3], 1 }
  0x90   :  { %83 = vsyncpa [#allocation6], 1 }
  0x91   :  { %84 = vsyncpa [#allocation4], 1 }

</bundles_post_ra>
